<compile_context>
chip_gen: v6e
topology: v6e:2x2x1
jax: 0.10.0
libtpu: 0.0.40
codegen_flags: <defaults>
</compile_context>

<pallas_src>
import jax
import jax.numpy as jnp
from jax.experimental import pallas as pl
from jax.experimental.pallas import tpu as pltpu


def _round_up(a, b):
    return (a + b - 1) // b * b


def fcah_kernel(x_ref, w_ref, o_ref):
    # x_ref: (TN, THW) activation tile (f32/bf16), lane-dense flattened spatial chunk.
    # w_ref: (1, THW)  f32 folded weights (Gaussian DC column * conv_w / (H*w)).
    # o_ref: (TN, 1)   f32 attention logits; resident accumulator across the
    #                  "arbitrary" lane-chunk grid axis k.
    k = pl.program_id(1)

    @pl.when(k == 0)
    def _init():
        o_ref[...] = jnp.zeros_like(o_ref)

    x = x_ref[...].astype(jnp.float32)            # upcast after DMA (v5e has no bf16 VPU)
    o_ref[...] += jnp.sum(x * w_ref[...], axis=1, keepdims=True)  # VPU mul + XLU lane reduce

    @pl.when(k == pl.num_programs(1) - 1)
    def _finalize():
        o_ref[...] = jax.nn.sigmoid(o_ref[...])   # EUP exp + reciprocal


def fcah_forward(x, conv1_w, *, block_rows=None):
    """x: (B, C, H, W) float32/bfloat16, conv1_w: (1, 1, 1, 1) f32 -> (B, C, 1, 1) f32.

    Note: the literal PyTorch Conv2d(1, 1, 1) only type-checks for C == 1 after
    pooling; for C > 1 the scalar weight is broadcast across channels (documented
    generalization -- the per-channel math is identical).
    """
    B, C, H, W = x.shape
    N = B * C
    HW = H * W
    w_crop = min(W, H)

    # Fold: Gaussian low-pass DC column * 1x1-conv scalar * 1/(H*w_crop) pooling norm.
    sigma = 0.1 / 2.0
    f = jnp.fft.fftfreq(H).astype(jnp.float32)
    g = jnp.exp(-(f * f) / (2.0 * sigma * sigma))                     # (H,)
    scale = conv1_w.reshape(()).astype(jnp.float32) / jnp.float32(H * w_crop)
    wvec = (jnp.repeat(g, W) * scale).reshape(1, HW)                  # (1, HW) f32

    # Lane-dense layout: rows = B*C, lanes = H*W (free reshape for contiguous NCHW).
    x2 = x.reshape(N, HW)
    itemsize = x2.dtype.itemsize
    sub = max(8, 32 // itemsize)          # sublane quantum: 8 (f32), 16 (bf16), 32 (int8)

    # --- generation-aware VMEM budgets (review: bigger tiles, v7x stays < 64 MiB) ---
    try:
        vmem_cap = pltpu.get_tpu_info().vmem_capacity_bytes
    except Exception:
        vmem_cap = 64 * 1024 * 1024                       # assume smallest (v7x per-TC)
    if vmem_cap >= 100 * 1024 * 1024:                     # v5e / v6e: 128 MiB physical
        per_buf, vmem_limit = 24 * 1024 * 1024, 64 * 1024 * 1024
    else:                                                 # v7x: 64 MiB per TC
        per_buf, vmem_limit = 16 * 1024 * 1024, 48 * 1024 * 1024

    # --- lane (H*W) tiling: only needed when even a minimal row block overflows ---
    if sub * HW * itemsize <= per_buf or HW % 128 != 0:
        THW = HW
        # TODO(synk): for huge H*W that is not a multiple of 128, lane-pad W once on
        # the host instead of relying on a single (possibly over-budget) lane block.
    else:
        THW = max(128, min(HW, (per_buf // (sub * itemsize)) // 128 * 128))
        while HW % THW:                   # must divide HW exactly (reduction axis:
            THW -= 128                    # ragged lane blocks would sum garbage)

    # --- row (B*C) tiling: biggest tile that fits the per-buffer budget ------------
    rows_fit = max(sub, (per_buf // (THW * itemsize)) // sub * sub)
    if block_rows is None:
        TN = rows_fit
        if N > 8:                         # keep >=2 row steps so both v7x TCs get work
            TN = min(TN, _round_up((N + 1) // 2, sub))
    else:
        TN = max(sub, (block_rows // sub) * sub)
    TN = min(TN, _round_up(N, sub))

    # No host-side padding: ragged last row block reads independent garbage rows
    # whose writeback is masked (rows never interact; only out[:N] is meaningful).
    grid = (pl.cdiv(N, TN), HW // THW)

    out = pl.pallas_call(
        fcah_kernel,
        out_shape=jax.ShapeDtypeStruct((N, 1), jnp.float32),
        grid=grid,
        in_specs=[
            pl.BlockSpec((TN, THW), lambda n, k: (n, k)),   # activations, lane-dense
            pl.BlockSpec((1, THW), lambda n, k: (0, k)),    # folded weight chunk
        ],
        out_specs=pl.BlockSpec((TN, 1), lambda n, k: (n, 0)),  # resident across k
        compiler_params=pltpu.CompilerParams(
            dimension_semantics=("parallel", "arbitrary"),
            vmem_limit_bytes=vmem_limit,
        ),
    )(x2, wvec)

    return out.reshape(B, C, 1, 1)


def fcah_ref(x, conv1_w):
    """Pure-JAX reference mirroring the literal PyTorch forward (FFT pipeline)."""
    B, C, H, W = x.shape
    t = jnp.fft.fft(x, axis=-1)
    f = jnp.fft.fftfreq(H).astype(jnp.float32)
    i, j = jnp.meshgrid(f, f)                                    # 'xy' indexing, as numpy
    filt = jnp.exp(-(i * i + j * j) / (2.0 * (0.1 / 2.0) ** 2))  # (H, H)
    h = min(H, H)
    w = min(W, H)
    t = t[:, :, :h, :w]
    filt = filt[:h, :w][None, None].astype(t.dtype)
    fd = jnp.fft.ifft(t * filt, axis=-1)
    out = (jnp.mean(jnp.real(fd), axis=(2, 3), keepdims=True)
           + jnp.mean(jnp.imag(fd), axis=(2, 3), keepdims=True))
    out = out * conv1_w.reshape(())   # Conv2d(1, 1, 1, bias=False) == scalar multiply
    return jax.nn.sigmoid(out)


if __name__ == "__main__":
    # C > 1 uses the documented broadcast of the 1x1-conv scalar across channels
    # (the literal PyTorch Conv2d(1, 1, 1) only type-checks for C == 1).
    B, C, H, W = 2, 8, 16, 16
    key = jax.random.PRNGKey(0)
    kx, kw = jax.random.split(key)

    x = jax.random.normal(kx, (B, C, H, W), dtype=jnp.float32)
    # nn.Conv2d(1, 1, 1, bias=False): weight (1,1,1,1); kaiming-uniform, fan_in=1 -> U(-1,1).
    conv1_w = jax.random.uniform(kw, (1, 1, 1, 1), jnp.float32, minval=-1.0, maxval=1.0)

    out = jax.block_until_ready(fcah_forward(x, conv1_w))
    ref = jax.block_until_ready(fcah_ref(x, conv1_w))
    assert out.shape == (B, C, 1, 1)
    assert jnp.allclose(out, ref, atol=1e-5, rtol=1e-5), (out, ref)

    # Recommended production path: stream bf16 activations (kernel upcasts after the
    # DMA, so HBM traffic halves while the accumulate stays f32).
    out_bf16 = jax.block_until_ready(fcah_forward(x.astype(jnp.bfloat16), conv1_w))
    assert jnp.allclose(out_bf16, ref, atol=2e-2, rtol=2e-2), (out_bf16, ref)

    print("KERNEL_OK")
</pallas_src>

<mosaic_0001>
module attributes {stable_mosaic.version = 11 : i64} {
  func.func @fcah_kernel(%arg0: i32, %arg1: i32, %arg2: memref<8x256xf32, #tpu.memory_space<vmem>>, %arg3: memref<1x256xf32, #tpu.memory_space<vmem>>, %arg4: memref<8x1xf32, #tpu.memory_space<vmem>>) attributes {dimension_semantics = [#tpu.dimension_semantics<parallel>, #tpu.dimension_semantics<arbitrary>], iteration_bounds = array<i64: 2, 1>, scalar_prefetch = 0 : i64, scratch_operands = 0 : i64, tpu.core_type = #tpu.core_type<tc>, window_params = [{transform_indices = @transform_0, window_bounds = array<i64: 8, 256>}, {transform_indices = @transform_1, window_bounds = array<i64: 1, 256>}, {transform_indices = @transform_2, window_bounds = array<i64: 8, 1>}]} {
    %c0_i32 = arith.constant 0 : i32
    %0 = arith.cmpi eq, %arg1, %c0_i32 : i32
    %1 = arith.extui %0 : i1 to i32
    %c0_i32_0 = arith.constant 0 : i32
    %2 = arith.cmpi ne, %1, %c0_i32_0 : i32
    scf.if %2 {
      %cst_10 = arith.constant 0.000000e+00 : f32
      %15 = vector.broadcast %cst_10 : f32 to vector<8x1xf32>
      %c0_11 = arith.constant 0 : index
      %c0_12 = arith.constant 0 : index
      %16 = vector.load %arg4[%c0_11, %c0_12] : memref<8x1xf32, #tpu.memory_space<vmem>>, vector<8x1xf32>
      tpu.vector_store %arg4[%c0_11, %c0_12], %15 {strides = array<i32>} : memref<8x1xf32, #tpu.memory_space<vmem>>, vector<8x1xf32>,
    } else {
    }
    %c0 = arith.constant 0 : index
    %c0_1 = arith.constant 0 : index
    %3 = vector.load %arg2[%c0, %c0_1] : memref<8x256xf32, #tpu.memory_space<vmem>>, vector<8x256xf32>
    %c0_2 = arith.constant 0 : index
    %c0_3 = arith.constant 0 : index
    %4 = vector.load %arg4[%c0_2, %c0_3] : memref<8x1xf32, #tpu.memory_space<vmem>>, vector<8x1xf32>
    %c0_4 = arith.constant 0 : index
    %c0_5 = arith.constant 0 : index
    %5 = vector.load %arg3[%c0_4, %c0_5] : memref<1x256xf32, #tpu.memory_space<vmem>>, vector<1x256xf32>
    %6 = vector.broadcast %5 : vector<1x256xf32> to vector<8x256xf32>
    %7 = arith.mulf %3, %6 : vector<8x256xf32>
    %cst = arith.constant dense<0.000000e+00> : vector<8xf32>
    %8 = vector.multi_reduction <add>, %7, %cst [1] : vector<8x256xf32> to vector<8xf32>
    %9 = vector.shape_cast %8 : vector<8xf32> to vector<8x1xf32>
    %10 = arith.addf %4, %9 : vector<8x1xf32>
    %c0_6 = arith.constant 0 : index
    %c0_7 = arith.constant 0 : index
    %11 = vector.load %arg4[%c0_6, %c0_7] : memref<8x1xf32, #tpu.memory_space<vmem>>, vector<8x1xf32>
    tpu.vector_store %arg4[%c0_6, %c0_7], %10 {strides = array<i32>} : memref<8x1xf32, #tpu.memory_space<vmem>>, vector<8x1xf32>,
    %c0_i32_8 = arith.constant 0 : i32
    %12 = arith.cmpi eq, %arg1, %c0_i32_8 : i32
    %13 = arith.extui %12 : i1 to i32
    %c0_i32_9 = arith.constant 0 : i32
    %14 = arith.cmpi ne, %13, %c0_i32_9 : i32
    scf.if %14 {
      %c0_10 = arith.constant 0 : index
      %c0_11 = arith.constant 0 : index
      %15 = vector.load %arg4[%c0_10, %c0_11] : memref<8x1xf32, #tpu.memory_space<vmem>>, vector<8x1xf32>
      %16 = arith.negf %15 : vector<8x1xf32>
      %17 = math.exp %16 : vector<8x1xf32>
      %cst_12 = arith.constant 1.000000e+00 : f32
      %18 = vector.broadcast %cst_12 : f32 to vector<8x1xf32>
      %19 = arith.addf %18, %17 : vector<8x1xf32>
      %20 = arith.divf %18, %19 : vector<8x1xf32>
      %c0_13 = arith.constant 0 : index
      %c0_14 = arith.constant 0 : index
      %21 = vector.load %arg4[%c0_13, %c0_14] : memref<8x1xf32, #tpu.memory_space<vmem>>, vector<8x1xf32>
      tpu.vector_store %arg4[%c0_13, %c0_14], %20 {strides = array<i32>} : memref<8x1xf32, #tpu.memory_space<vmem>>, vector<8x1xf32>,
    } else {
    }
    return
  }
  func.func @transform_0(%arg0: i32, %arg1: i32) -> (i32, i32) {
    %c0_i32 = arith.constant 0 : i32
    return %arg0, %arg1 : i32, i32
  }
  func.func @transform_1(%arg0: i32, %arg1: i32) -> (i32, i32) {
    %c0_i32 = arith.constant 0 : i32
    %c0_i32_0 = arith.constant 0 : i32
    return %c0_i32, %arg1 : i32, i32
  }
  func.func @transform_2(%arg0: i32, %arg1: i32) -> (i32, i32) {
    %c0_i32 = arith.constant 0 : i32
    %c0_i32_0 = arith.constant 0 : i32
    return %arg0, %c0_i32 : i32, i32
  }
}

</mosaic_0001>

<bundles_post_ra>
// kernel: tpu_custom_call.1
= control target key start
LH: loop header
LB: loop body
LE: loop exit
PB: predicated region body
PF: predicated region fallthrough
CT: control target
= control target key end

     0   :  { %7 = vsyncpa [#allocation3], 0  ;;  %s666_s0 = inlined_call_operand.hbm [shape: f32[16,256], index: 0, kind: input, shape index: {}]   ;;  %s667_s1 = inlined_call_operand.hbm [shape: f32[1,256], index: 1, kind: input, shape index: {}]   ;;  %s668_s2 = inlined_call_operand.vmem [shape: f32[16,1], index: 2, kind: output, shape index: {}]  }
   0x1   :  { %9 = vsyncpa [#allocation3 + $0x1], 0 }
   0x2   :  { %10 = vsyncpa [#allocation5], 0  ;;  %s542_s9 = smov 0   ;;  %s544_s10 = smov 0  }
   0x3   :  { %s546_s11 = smov 0   ;;  %s548_s12 = smov 0  }
   0x4   :  { %s550_s13 = smov 0   ;;  %s552_s14 = smov 0  }
   0x5 LB: > { %s327_s15 = sadd.s32 4294967295, %s522_s14   ;;  %p50_p0 = scmp.ne.s32.totalorder %s506_s10, %s502_s9  ;;  %s522_s14 = sphi %s552_s14, %s16_s14   ;;  %s518_s13 = sphi %s550_s13, %s678_s13   ;;  %s514_s12 = sphi %s548_s12, %s677_s12   ;;  %s510_s11 = sphi %s546_s11, %s676_s11   ;;  %s506_s10 = sphi %s544_s10, %s675_s10   ;;  %s502_s9 = sphi %s542_s9, %s674_s9  }
   0x6   : > { %p572_p1 = scmp.eq.s32.totalorder %s327_s15, 0  ;;  %p329_p2 = scmp.ge.s32.totalorder %s522_s14, 1 }
   0x7   : > { %p113_p3 = scmp.lt.s32.totalorder %s522_s14, 3  ;;  %s524_s19 = smov [#allocation4]  }
   0x8   : > { %p580_p4 = por %p572_p1, %p50_p0  ;;  %s129_s20 = sshll.u32 %s524_s19, 4  ;;  %s130_s20 = int_to_ptr.vmem [resolvable:$true] %s129_s20 }
   0x9   : > { %p584_p5 = pnand %p329_p2, %p113_p3  ;;  %s28_s22 = sadd.s32 1, %s518_s13 }
   0xa   : > { %s37_s23 = sadd.s32 1, %s510_s11  ;;  %p30_p8 = scmp.ge.s32.totalorder %s28_s22, 2 }
   0xb   : > { %p349_p6 = pneg %p584_p5  ;;  %s425_s24 = scalar_lea.vmem %s130_s20, 32 }
   0xc   : > { %p426_p10 = scmp.ne.s32.totalorder %s130_s20, %s425_s24  ;;  %p433_p13 = scmp.lt.s32.totalorder %s130_s20, %s130_s20 }
   0xd   : > { %p592_p7 = pnand %p349_p6, %p572_p1  ;;  %p434_p0 = scmp.lt.s32.totalorder %s425_s24, %s425_s24 }
   0xf   : > { %p416_p9 = pneg %p592_p7  ;;  %p435_p2 = por %p434_p0, %p433_p13 }
  0x11   : > { %p428_p11 = pnand %p426_p10, %p416_p9 }
  0x13   : > { %p429_p12 = pneg %p428_p11 }
  0x15   : > { %p436_p3 = pnand %p435_p2, %p429_p12 }
  0x17   : > { %439 = shalt.err (!%p436_p3)
}
  0x18   : > { %352 = dma.hbm_to_vmem [thread:$0]  (!%p592_p7), %s667_s1, 32, %s130_s20, [#allocation5]  }
  0x19   : > { %s680_s22 = smov (%p30_p8, %s28_s22), 0  ;;  %p44_p6 = scmp.ne.s32.totalorder %s510_s11, %s506_s10 }
  0x1a   : > { %p45_p9 = scmp.eq.s32.totalorder %s522_s14, 0  ;;  %s32_s27 = ssub.s32 %s518_s13, %s680_s22 }
  0x1b   : > { %p358_p10 = scmp.lt.s32.totalorder %s522_s14, 2  ;;  %p35_p11 = scmp.eq.s32.totalorder %s32_s27, 0 }
  0x1c   : > { %p46_p12 = por %p45_p9, %p44_p6  ;;  %s140_s28 = sand.u32 1, %s510_s11  }
  0x1d   : > { %s342_s29 = sshll.u32 %s518_s13, 8  ;;  %s332_s3 = sshll.u32 %s140_s28, 4 }
  0x1e   : > { %s616_s30 = scalar_select %p35_p11, %s510_s11, %s37_s23  }
  0x1f   : > { %s152_s6 = scalar_lea.hbm %s666_s0, %s342_s29  ;;  %s144_s7 = scalar_lea.vmem [#allocation2], %s332_s3 }
  0x20   : > { %s154_s8 = sshll.u32 %s144_s7, 4  ;;  %p621_p7 = pnand %p358_p10, %p46_p12  ;;  %s155_s8 = int_to_ptr.vmem [resolvable:$true] %s154_s8 }
  0x21   : > { %s141_s15 = scalar_lea.sflag [#allocation3], %s140_s28  ;;  %s453_s19 = scalar_lea.vmem %s155_s8, 256 }
  0x22   : > { %p442_p8 = pneg %p621_p7  ;;  %p454_p13 = scmp.ne.s32.totalorder %s155_s8, %s453_s19 }
  0x23   : > { %s525_s20 = smov [#allocation2]  }
  0x24   : > { %p456_p0 = pnand %p454_p13, %p442_p8  ;;  %s458_s21 = sshll.u32 %s525_s20, 4  ;;  %s459_s21 = int_to_ptr.vmem [resolvable:$false] %s458_s21 }
  0x25   : > { %s460_s23 = scalar_lea.vmem %s459_s21, 512  ;;  %p461_p3 = scmp.lt.s32.totalorder %s155_s8, %s459_s21 }
  0x26   : > { %p457_p2 = pneg %p456_p0  ;;  %p462_p6 = scmp.lt.s32.totalorder %s460_s23, %s453_s19 }
  0x28   : > { %p463_p9 = por %p462_p6, %p461_p3 }
  0x2a   : > { %p464_p10 = pnand %p463_p9, %p457_p2 }
  0x2c   : > { %467 = shalt.err (!%p464_p10)
}
  0x2d   : > { %356 = dma.hbm_to_vmem [thread:$0]  (!%p621_p7), %s152_s6, 256, %s155_s8, %s141_s15  }
  0x2e   : > { %163 = sbr.rel (%p584_p5) target bundleno = 247 (0xf7), region = 28  ;;  %s165_s24 = sand.u32 (!%p584_p5), 1, %s506_s10  }
  0x2f   : > { %s336_s25 = sshll.u32 (!%p584_p5), %s165_s24, 4  ;;  %s166_s26 = scalar_lea.sflag (!%p584_p5), [#allocation3], %s165_s24 }
  0x30   : > { %s169_s27 = scalar_lea.vmem (!%p584_p5), [#allocation2], %s336_s25 }
  0x33   : > { %493 = dma.done.wait (%p580_p4), %s166_s26, 256  }
  0x34   : > { %495 = vsyncadd (%p580_p4), %s166_s26, 4294967040 }
  0x35   : > { %497 = dma.done.wait (%p572_p1), [#allocation5], 32  }
  0x36   : > { %499 = vsyncadd (%p572_p1), [#allocation5], 4294967264  ;;  %v210_v0 = vlaneseq  ;;  %p195_p5 = scmp.lt.s32.totalorder %s514_s12, 1  ;;  %vm203_vm0 = vcmask 7168   ;;  %v526_v4 = vmov 0.0   ;;  %v205_v5 = vld [vmem:[%s169_s27] sm:$0xff] }
  0x37   : > { %v206_v6 = vld [vmem:[%s169_s27 + $0x8] sm:$0xff]  ;;  %v208_v7 = vld [vmem:[#allocation4] sm:$0x3] }
  0x38   : > { %v211_v1 = vshrl.u32 %v210_v0, 7  ;;  %s682_s12 = smov (!%p195_p5, %s514_s12), 1 }
  0x39   : > { %s338_s18 = sshll.u32 %s682_s12, 3 }
  0x3a   : > { %v212_v2 = vsub.s32 0, %v211_v1  ;;  %v216_v3 = vsub.s32 1, %v211_v1  ;;  %s198_s17 = scalar_lea.vmem %s668_s2, %s338_s18 }
  0x3b   : > { %204 = vst.msk [vmem:[%s198_s17] sm:$0xff] %vm203_vm0, %v526_v4 }
  0x3c   : > { %v213_v8 = vrot.slane %v208_v7, %v212_v2  ;;  %v217_v9 = vrot.slane %v208_v7, %v216_v3 }
  0x3e   : > { %v220_v10 = vmul.f32 %v213_v8, %v205_v5  ;;  %v221_v11 = vmul.f32 %v217_v9, %v206_v6 }
  0x40   : > { %v222_v12 = vadd.f32 %v221_v11, %v220_v10 }
  0x42   : > { %223 = vadd.xlane.f32.xlu0 %v222_v12  ;;  %v207_v13 = vld [vmem:[%s198_s17] sm:$0xff] }
  0xcb   : > { %v224_v14 = vpop.xlane.xlu0 %223 }
  0xcc   : > { %v225_v15 = vadd.f32 %v224_v14, %v207_v13 }
  0xce   : > { %227 = vst.msk [vmem:[%s198_s17] sm:$0xff] %vm203_vm0, %v225_v15 }
  0xd5   : > { %v231_v16 = vld [vmem:[%s198_s17] sm:$0xff] }
  0xd6   : > { %v339_v17 = vmul.f32 -1.442695, %v231_v16 }
  0xd8   : > { %410 = vpow2.f32 %v339_v17 }
  0xe5   : > { %v411_v18 = vpop.eup %410 }
  0xe6   : > { %v235_v19 = vadd.f32 1.0, %v411_v18 }
  0xe8   : > { %412 = vrcp.f32 %v235_v19 }
  0xf5   : > { %v413_v20 = vpop.eup %412 }
  0xf6   : > { %238 = vst.msk [vmem:[%s198_s17] sm:$0xff] %vm203_vm0, %v413_v20 }
  0xf7 PF: > { %s16_s14 = sadd.s32 1, %s522_s14   ;;  %s674_s9 = smov %s506_s10 }
  0xf8   : > { %p13_p1 = scmp.ge.s32.totalorder %s16_s14, 4   ;;  %s675_s10 = smov %s510_s11 }
  0xf9   : > { %s676_s11 = smov %s616_s30  ;;  %s677_s12 = smov %s518_s13 }
  0xfa   : > { %s678_s13 = smov %s680_s22  ;;  %15 = sbr.rel (!%p13_p1) target bundleno = 5 (0x5), region = 81 }
  0xff   :  { %258 = vsyncpa [#allocation3], 1 }
 0x100   :  { %260 = vsyncpa [#allocation3 + $0x1], 1 }
 0x101   :  { %261 = vsyncpa [#allocation5], 1 }

</bundles_post_ra>
